<compile_context>
chip_gen: v7x
topology: tpu7x:2x2x1
jax: 0.10.0
libtpu: 0.0.40
codegen_flags: <defaults>
</compile_context>

<pallas_src>
import functools

import jax
import jax.numpy as jnp
from jax.experimental import pallas as pl
from jax.experimental.pallas import tpu as pltpu


def _round_up(x, m):
    return ((x + m - 1) // m) * m


def _cdiv(a, b):
    return (a + b - 1) // b


def _ce_label_smooth_kernel(x_ref, t_ref, psum_ref, *,
                            epsilon, weight_sum, n_rows, tile_rows):
    # x_ref   : (TB, K) logits tile (native dtype), VMEM. K == full class dim.
    # t_ref   : (TB, 1) int32 class indices tile, VMEM.
    # psum_ref: (8, 128) f32 per-tile partial sum (lane-dense broadcast) of
    #           sum_j smoothed_j * log_softmax(x)_j over the tile's valid rows.
    pid = pl.program_id(0)

    x = x_ref[...].astype(jnp.float32)         # upcast in-kernel (HBM stays native)
    t = t_ref[...]                              # (TB, 1) int32

    tb, k = x.shape
    col = jax.lax.broadcasted_iota(jnp.int32, (tb, k), 1)                # (TB, K)
    row = pid * tile_rows + jax.lax.broadcasted_iota(jnp.int32, (tb, 1), 0)
    row_valid = row < n_rows                                             # batch tail mask

    # Numerically stable per-row logsumexp.
    m = jnp.max(x, axis=1, keepdims=True)                                # (TB, 1)
    shifted = x - m                                                      # (TB, K)
    lse = jnp.log(jnp.sum(jnp.exp(shifted), axis=1, keepdims=True))      # (TB, 1)

    # Fused target-gather + eps-sum (no log_probs materialization).
    w = jnp.where(col == t, jnp.float32(1.0), jnp.float32(epsilon))      # (TB, K)
    wsum = jnp.sum(w * shifted, axis=1, keepdims=True)                   # (TB, 1)
    contrib = wsum - jnp.float32(weight_sum) * lse                       # (TB, 1)
    contrib = jnp.where(row_valid, contrib, 0.0)                         # mask batch tail

    partial = jnp.sum(contrib, axis=0, keepdims=True)                    # (1, 1)
    psum_ref[...] = jnp.broadcast_to(partial, psum_ref.shape)            # lane-dense store


def cross_entropy_label_smooth(inputs, targets, epsilon=0.05, tile_rows=None):
    """inputs: (B, K) logits (any float dtype), targets: (B,) int labels -> scalar f32."""
    B, K = inputs.shape
    itemsize = jnp.dtype(inputs.dtype).itemsize

    # --- generation-aware VMEM sizing -------------------------------------
    try:
        vmem_cap = int(pltpu.get_tpu_info().vmem_capacity_bytes)
    except Exception:
        vmem_cap = 64 * 1024 * 1024                      # conservative (v7x-sized)
    # Explicit scoped-VMEM limit (leave ~16 MiB headroom for the compiler):
    # v5e/v6e (128 MiB) -> 112 MiB, v7x (64 MiB) -> 48 MiB.
    vmem_limit = max(32 * 1024 * 1024,
                     min(vmem_cap - 16 * 1024 * 1024, 112 * 1024 * 1024))

    kp_phys = _round_up(K, 128)                          # physical lane width per row
    # Per-tile working set: double-buffered native logits + ~3 live f32 (TB, K)
    # intermediates (upcast / shifted / exp).
    bytes_per_row = kp_phys * (2 * itemsize + 3 * 4)
    tile_budget = vmem_limit // 2

    if tile_rows is None:
        tb = (tile_budget // max(1, bytes_per_row)) // 8 * 8
        tb = max(8, min(tb, 1024))
        # v7x has 2 TensorCores: keep at least 2 "parallel" grid tiles when the
        # batch is big enough, otherwise one core idles.
        if tb >= B and B >= 16:
            tb = _round_up(_cdiv(B, 2), 8)
    else:
        tb = max(8, _round_up(int(tile_rows), 8))
    if tb >= B:
        tb = B                                            # single block == full batch dim
    num_tiles = _cdiv(B, tb)
    # TODO(synk): for very large K (>32k classes) tile the class axis too, with an
    # online (flash-style) logsumexp + running weighted-shifted partial, instead of
    # holding one full class row per batch tile (tb collapses to ~8 rows otherwise).

    # Targets are tiny: pad so every (tb, 1) target block is full.  The logits are
    # NOT padded (no extra HBM pass); the last logits tile may be partial and is
    # masked in-kernel via row_valid.  The class block width is the full K, so no
    # class padding or lane-tail masking is needed.
    t = targets.astype(jnp.int32)
    bp = num_tiles * tb
    if bp != B:
        t = jnp.pad(t, (0, bp - B))
    t = t.reshape(bp, 1)

    kernel = functools.partial(
        _ce_label_smooth_kernel,
        epsilon=float(epsilon),
        weight_sum=1.0 + float(epsilon) * (K - 1),        # sum_j smoothed_j
        n_rows=B,
        tile_rows=tb)

    partial_sums = pl.pallas_call(
        kernel,
        out_shape=jax.ShapeDtypeStruct((num_tiles, 8, 128), jnp.float32),
        grid_spec=pltpu.PrefetchScalarGridSpec(
            num_scalar_prefetch=0,
            grid=(num_tiles,),
            in_specs=[
                pl.BlockSpec((tb, K), lambda i: (i, 0)),   # logits tile, native dtype
                pl.BlockSpec((tb, 1), lambda i: (i, 0)),   # targets tile, int32
            ],
            out_specs=pl.BlockSpec((None, 8, 128), lambda i: (i, 0, 0)),
        ),
        compiler_params=pltpu.CompilerParams(
            dimension_semantics=("parallel",),             # independent batch tiles
            vmem_limit_bytes=int(vmem_limit),
        ),
    )(inputs, t)

    # Tiny epilogue: loss = mean over the true batch of (-contribution).
    return -(jnp.sum(partial_sums[:, 0, 0]) / B)


def _reference(inputs, targets, epsilon=0.05):
    # Pure-JAX reference matching the PyTorch module exactly (eps, not eps/K).
    log_probs = jax.nn.log_softmax(inputs.astype(jnp.float32), axis=1)
    one_hot = jax.nn.one_hot(targets, inputs.shape[1], dtype=jnp.float32)
    smoothed = (1.0 - epsilon) * one_hot + epsilon
    return jnp.mean(jnp.sum(-smoothed * log_probs, axis=1))


if __name__ == "__main__":
    key = jax.random.PRNGKey(0)
    k1, k2, k3, k4 = jax.random.split(key, 4)

    # Case 1: K not a multiple of 128 (unpadded lane-tail path), 2 full batch tiles.
    B1, K1 = 16, 200
    x1 = jax.random.normal(k1, (B1, K1), dtype=jnp.float32)
    t1 = jax.random.randint(k2, (B1,), 0, K1, dtype=jnp.int32)
    loss1 = cross_entropy_label_smooth(x1, t1, epsilon=0.05, tile_rows=8)
    jax.block_until_ready(loss1)
    ref1 = _reference(x1, t1, epsilon=0.05)
    assert jnp.allclose(loss1, ref1, rtol=1e-4, atol=1e-4), (loss1, ref1)

    # Case 2: batch not a multiple of the tile -> partial last logits block,
    # exercises the in-kernel row_valid masking (no HBM pad of the logits).
    B2, K2 = 13, 200
    x2 = jax.random.normal(k3, (B2, K2), dtype=jnp.float32)
    t2 = jax.random.randint(k4, (B2,), 0, K2, dtype=jnp.int32)
    loss2 = cross_entropy_label_smooth(x2, t2, epsilon=0.05, tile_rows=8)
    jax.block_until_ready(loss2)
    ref2 = _reference(x2, t2, epsilon=0.05)
    assert jnp.allclose(loss2, ref2, rtol=1e-4, atol=1e-4), (loss2, ref2)

    # Case 3: default auto tile sizing (generation-aware VMEM budget path),
    # single block equal to the full (non-multiple-of-8) batch dim.
    loss3 = cross_entropy_label_smooth(x2, t2, epsilon=0.05)
    jax.block_until_ready(loss3)
    assert jnp.allclose(loss3, ref2, rtol=1e-4, atol=1e-4), (loss3, ref2)

    print("KERNEL_OK")
</pallas_src>

<mosaic_0001>
module attributes {stable_mosaic.version = 11 : i64} {
  func.func @_ce_label_smooth_kernel(%arg0: i32, %arg1: memref<8x200xf32, #tpu.memory_space<vmem>>, %arg2: memref<8x1xi32, #tpu.memory_space<vmem>>, %arg3: memref<1x8x128xf32, #tpu.memory_space<vmem>>) attributes {dimension_semantics = [#tpu.dimension_semantics<parallel>], iteration_bounds = array<i64: 2>, scalar_prefetch = 0 : i64, scratch_operands = 0 : i64, tpu.core_type = #tpu.core_type<tc>, window_params = [{transform_indices = @transform_0, window_bounds = array<i64: 8, 200>}, {transform_indices = @transform_1, window_bounds = array<i64: 8, 1>}, {transform_indices = @transform_2, window_bounds = array<i64: 1, 8, 128>}]} {
    %c0 = arith.constant 0 : index
    %c0_0 = arith.constant 0 : index
    %0 = vector.load %arg1[%c0, %c0_0] : memref<8x200xf32, #tpu.memory_space<vmem>>, vector<8x200xf32>
    %c0_1 = arith.constant 0 : index
    %c0_2 = arith.constant 0 : index
    %1 = vector.load %arg2[%c0_1, %c0_2] : memref<8x1xi32, #tpu.memory_space<vmem>>, vector<8x1xi32>
    %2 = tpu.iota {dimensions = array<i32: 1>} : vector<8x200xi32>
    %c8_i32 = arith.constant 8 : i32
    %3 = arith.muli %arg0, %c8_i32 : i32
    %4 = tpu.iota {dimensions = array<i32: 0>} : vector<8x1xi32>
    %5 = vector.broadcast %3 : i32 to vector<8x1xi32>
    %6 = arith.addi %5, %4 : vector<8x1xi32>
    %c16_i32 = arith.constant 16 : i32
    %7 = vector.broadcast %c16_i32 : i32 to vector<8x1xi32>
    %8 = arith.cmpi slt, %6, %7 : vector<8x1xi32>
    %cst = arith.constant dense<0xFF800000> : vector<8xf32>
    %9 = vector.multi_reduction <maximumf>, %0, %cst [1] : vector<8x200xf32> to vector<8xf32>
    %10 = vector.shape_cast %9 : vector<8xf32> to vector<8x1xf32>
    %11 = vector.broadcast %10 : vector<8x1xf32> to vector<8x200xf32>
    %12 = arith.subf %0, %11 : vector<8x200xf32>
    %13 = math.exp %12 : vector<8x200xf32>
    %cst_3 = arith.constant dense<0.000000e+00> : vector<8xf32>
    %14 = vector.multi_reduction <add>, %13, %cst_3 [1] : vector<8x200xf32> to vector<8xf32>
    %15 = vector.shape_cast %14 : vector<8xf32> to vector<8x1xf32>
    %16 = math.log %15 : vector<8x1xf32>
    %17 = vector.broadcast %1 : vector<8x1xi32> to vector<8x200xi32>
    %18 = arith.cmpi eq, %2, %17 : vector<8x200xi32>
    %cst_4 = arith.constant 1.000000e+00 : f32
    %cst_5 = arith.constant 5.000000e-02 : f32
    %19 = vector.broadcast %cst_4 : f32 to vector<8x200xf32>
    %20 = vector.broadcast %cst_5 : f32 to vector<8x200xf32>
    %21 = arith.select %18, %19, %20 : vector<8x200xi1>, vector<8x200xf32>
    %22 = arith.mulf %21, %12 : vector<8x200xf32>
    %cst_6 = arith.constant dense<0.000000e+00> : vector<8xf32>
    %23 = vector.multi_reduction <add>, %22, %cst_6 [1] : vector<8x200xf32> to vector<8xf32>
    %24 = vector.shape_cast %23 : vector<8xf32> to vector<8x1xf32>
    %cst_7 = arith.constant 1.095000e+01 : f32
    %25 = vector.broadcast %cst_7 : f32 to vector<8x1xf32>
    %26 = arith.mulf %25, %16 : vector<8x1xf32>
    %27 = arith.subf %24, %26 : vector<8x1xf32>
    %cst_8 = arith.constant 0.000000e+00 : f32
    %28 = vector.broadcast %cst_8 : f32 to vector<8x1xf32>
    %29 = arith.select %8, %27, %28 : vector<8x1xi1>, vector<8x1xf32>
    %cst_9 = arith.constant dense<0.000000e+00> : vector<1xf32>
    %30 = vector.multi_reduction <add>, %29, %cst_9 [0] : vector<8x1xf32> to vector<1xf32>
    %31 = vector.shape_cast %30 : vector<1xf32> to vector<1x1xf32>
    %32 = vector.shape_cast %31 : vector<1x1xf32> to vector<1x1xf32>
    %33 = vector.broadcast %32 : vector<1x1xf32> to vector<8x128xf32>
    %c0_10 = arith.constant 0 : index
    %c0_11 = arith.constant 0 : index
    %c0_12 = arith.constant 0 : index
    %34 = vector.load %arg3[%c0_10, %c0_11, %c0_12] : memref<1x8x128xf32, #tpu.memory_space<vmem>>, vector<1x8x128xf32>
    %35 = vector.shape_cast %34 : vector<1x8x128xf32> to vector<8x128xf32>
    %36 = vector.shape_cast %33 : vector<8x128xf32> to vector<1x8x128xf32>
    tpu.vector_store %arg3[%c0_10, %c0_11, %c0_12], %36 {strides = array<i32>} : memref<1x8x128xf32, #tpu.memory_space<vmem>>, vector<1x8x128xf32>,
    return
  }
  func.func @transform_0(%arg0: i32) -> (i32, i32) {
    %c0_i32 = arith.constant 0 : i32
    %c0_i32_0 = arith.constant 0 : i32
    return %arg0, %c0_i32 : i32, i32
  }
  func.func @transform_1(%arg0: i32) -> (i32, i32) {
    %c0_i32 = arith.constant 0 : i32
    %c0_i32_0 = arith.constant 0 : i32
    return %arg0, %c0_i32 : i32, i32
  }
  func.func @transform_2(%arg0: i32) -> (i32, i32, i32) {
    %c0_i32 = arith.constant 0 : i32
    %c0_i32_0 = arith.constant 0 : i32
    %c0_i32_1 = arith.constant 0 : i32
    return %arg0, %c0_i32, %c0_i32_0 : i32, i32, i32
  }
}

</mosaic_0001>

<bundles_post_ra>
// kernel: tpu_custom_call.1
= control target key start
LH: loop header
LB: loop body
LE: loop exit
PB: predicated region body
PF: predicated region fallthrough
CT: control target
= control target key end

     0   :  { %7 = vsyncpa [#allocation3], 0  ;;  %s684_s0 = inlined_call_operand.hbm [shape: f32[16,200], index: 0, kind: input, shape index: {}]   ;;  %s685_s1 = inlined_call_operand.vmem [shape: s32[16,1], index: 1, kind: input, shape index: {}]   ;;  %s686_s2 = inlined_call_operand.hbm [shape: f32[2,8,128], index: 2, kind: output, shape index: {}]  }
   0x1   :  { %9 = vsyncpa [#allocation3 + $0x1], 0 }
   0x2   :  { %10 = vsyncpa [#allocation4], 0 }
   0x3   :  { %12 = vsyncpa [#allocation4 + $0x1], 0  ;;  %s513_s9 = smov 0   ;;  %s515_s10 = smov 0  }
   0x4   :  { %s517_s11 = smov 0   ;;  %s519_s12 = smov 0  }
   0x5 LB: > { %s534_s13 = sadd.s32 4294967295, %s492_s12   ;;  %s325_s14 = sadd.s32 4294967294, %s492_s12   ;;  %s492_s12 = sphi %s519_s12, %s701_s12   ;;  %s488_s11 = sphi %s517_s11, %s700_s11   ;;  %s484_s10 = sphi %s515_s10, %s699_s10   ;;  %s480_s9 = sphi %s513_s9, %s698_s9  }
   0x6   : > { %s538_s15 = sadd.s32 1, %s492_s12   ;;  %s25_s16 = sadd.s32 1, %s488_s11 }
   0x7   : > { %s22_s17 = ssub.s32 %s492_s12, %s538_s15  ;;  %p32_p0 = scmp.ne.s32.totalorder %s488_s11, %s484_s10 }
   0x8   : > { %p23_p1 = scmp.eq.s32.totalorder %s22_s17, 0  ;;  %p33_p2 = scmp.eq.s32.totalorder %s492_s12, 0 }
   0x9   : > { %p38_p3 = scmp.ne.s32.totalorder %s484_s10, %s480_s9  ;;  %p39_p4 = scmp.eq.s32.totalorder %s534_s13, 0 }
   0xa   : > { %s550_s18 = scalar_select %p23_p1, %s488_s11, %s25_s16  }
   0xb   : > { %p552_p5 = por %p33_p2, %p32_p0  ;;  %p556_p6 = por %p39_p4, %p38_p3 }
   0xc   : > { %p88_p7 = scmp.eq.s32.totalorder %s534_s13, 1  ;;  %p94_p8 = scmp.eq.s32.totalorder %s325_s14, 1 }
   0xd   : > { %p353_p10 = scmp.lt.s32.totalorder %s492_s12, 2  ;;  %s114_s23 = sand.u32 1, %s488_s11  }
   0xe   : > { %p563_p11 = por %p88_p7, %p32_p0  ;;  %p567_p12 = por %p94_p8, %p38_p3 }
   0xf   : > { %s340_s24 = sshll.u32 %s492_s12, 8  ;;  %s328_s25 = sshll.u32 %s114_s23, 4 }
  0x10   : > { %s690_s21 = scalar_select %p563_p11, 1, 0 }
  0x11   : > { %s691_s22 = scalar_select %p567_p12, 1, 0 }
  0x12   : > { %s576_s28 = scalar_lea.hbm %s684_s0, %s340_s24  ;;  %s118_s29 = scalar_lea.vmem [#allocation2], %s328_s25 }
  0x13   : > { %s126_s30 = sshll.u32 %s118_s29, 4  ;;  %p580_p13 = pnand %p353_p10, %p552_p5  ;;  %s584_s30 = int_to_ptr.vmem [resolvable:$true] %s126_s30 }
  0x14   : > { %s115_s4 = scalar_lea.sflag [#allocation3], %s114_s23  ;;  %s396_s5 = scalar_lea.hbm %s576_s28, 256 }
  0x15   : > { %p397_p2 = scmp.ne.s32.totalorder %s576_s28, %s396_s5  ;;  %p398_p3 = pneg %p580_p13 }
  0x16   : > { %s401_s8 = scalar_lea.hbm %s684_s0, 512  ;;  %p402_p5 = scmp.lt.u32.totalorder %s576_s28, %s684_s0 }
  0x17   : > { %p399_p4 = pnand %p398_p3, %p397_p2  ;;  %p403_p8 = scmp.lt.u32.totalorder %s401_s8, %s396_s5 }
  0x18   : > { %p405_p9 = scmp.lt.u32.totalorder %s396_s5, %s576_s28 }
  0x19   : > { %p400_p7 = pneg %p399_p4  ;;  %p404_p10 = por %p403_p8, %p402_p5 }
  0x1b   : > { %p406_p0 = por %p405_p9, %p404_p10 }
  0x1d   : > { %p407_p1 = pnand %p406_p0, %p400_p7 }
  0x1f   : > { %410 = shalt.err (!%p407_p1)
}
  0x20   : > { %s411_s17 = scalar_lea.vmem %s584_s30, 256  ;;  %s494_s19 = smov [#allocation2]  }
  0x21   : > { %p412_p2 = scmp.ne.s32.totalorder %s584_s30, %s411_s17  ;;  %s416_s23 = sshll.u32 %s494_s19, 4  ;;  %s417_s23 = int_to_ptr.vmem [resolvable:$false] %s416_s23 }
  0x22   : > { %s418_s24 = scalar_lea.vmem %s417_s23, 512  ;;  %p419_p11 = scmp.lt.s32.totalorder %s584_s30, %s417_s23 }
  0x23   : > { %p414_p4 = pnand %p412_p2, %p398_p3  ;;  %p420_p5 = scmp.lt.s32.totalorder %s418_s24, %s411_s17 }
  0x25   : > { %p415_p12 = pneg %p414_p4  ;;  %p421_p8 = por %p420_p5, %p419_p11 }
  0x27   : > { %p422_p9 = pnand %p421_p8, %p415_p12 }
  0x29   : > { %425 = shalt.err (!%p422_p9)
}
  0x2a   : > { %348 = dma.hbm_to_vmem [thread:$0]  (!%p580_p13), %s576_s28, 256, %s584_s30, %s115_s4  }
  0x2b   : > { %p693_p0 = scmp.lt.s32.totalorder %s492_s12, 3  ;;  %p694_p1 = scmp.ge.s32.totalorder %s492_s12, 1 }
  0x2d   : > { %p139_p3 = pnand %p694_p1, %p693_p0 }
  0x2e   : > { %s618_s25 = sand.u32 (!%p139_p3), 1, %s484_s10  }
  0x2f   : > { %142 = sbr.rel (%p139_p3) target bundleno = 406 (0x196), region = 28  ;;  %s332_s26 = sshll.u32 (!%p139_p3), %s618_s25, 4 }
  0x30   : > { %s145_s27 = scalar_lea.sflag (!%p139_p3), [#allocation3], %s618_s25  ;;  %s148_s29 = scalar_lea.vmem (!%p139_p3), [#allocation2], %s332_s26 }
  0x36   : > { %471 = dma.done.wait (%p556_p6), %s145_s27, 256  }
  0x37   : > { %473 = vsyncadd (%p556_p6), %s145_s27, 4294967040  ;;  %v495_v0 = vmov 0   ;;  %vm189_vm0 = vcmask 588800   ;;  %v177_v1 = vld [vmem:[%s148_s29] sm:$0xff]  ;;  %v178_v2 = vld [vmem:[%s148_s29 + $0x8] sm:$0xff]  ;;  %p173_p11 = scmp.lt.s32.totalorder %s534_s13, 1  ;;  %v180_v6 = vlaneseq }
  0x38   : > { %389 = vset.pattern.permute.xlu0 %v495_v0  ;;  %v190_v3 = vsel %vm189_vm0, %v178_v2, -inf  ;;  %v496_v15 = vmov 0.05   ;;  %s335_s20 = sshll.u32 %s534_s13, 3  ;;  %s333_s6 = sshll.u32 %s618_s25, 3 }
  0x39   : > { %v191_v4 = vmax.f32 %v177_v1, %v190_v3  ;;  %s174_s28 = scalar_select %p173_p11, %s534_s13, 1  ;;  %v181_v10 = vand.u32 127, %v180_v6  ;;  %v185_v27 = vshrl.u32 %v180_v6, 7  ;;  %v186_v28 = vstv %s335_s20 }
  0x3a   : > { %s337_s7 = sshll.u32 %s534_s13, 7  ;;  %s172_s8 = scalar_lea.vmem [#allocation5], %s333_s6 }
  0x3b   : > { %192 = vmax.xlane.f32.xlu0 %v191_v4  ;;  %s334_s30 = sshll.u32 %s174_s28, 3  ;;  %v182_v13 = vadd.s32 128, %v181_v10  ;;  %v187_v30 = vadd.s32 %v186_v28, %v185_v27  ;;  %s243_s14 = sshll.u32 %s172_s8, 4  ;;  %s642_s14 = int_to_ptr.vmem [resolvable:$true] %s243_s14 }
  0x3c   : > { %s176_s5 = scalar_lea.vmem %s685_s1, %s334_s30  ;;  %s640_s19 = scalar_lea.hbm %s686_s2, %s337_s7 }
  0x3d   : > { %v179_v5 = vld [vmem:[%s176_s5] sm:$0xff]  ;;  %vm188_vm3 = vcmp.lt.s32.totalorder %v187_v30, 16  ;;  %s230_s23 = scalar_lea.sflag [#allocation4], %s618_s25  ;;  %s426_s24 = scalar_lea.vmem %s642_s14, 128 }
  0x3e   : > { %p427_p6 = scmp.ne.s32.totalorder %s642_s14, %s426_s24  ;;  %p695_p12 = scmp.ne.s32.totalorder %s690_s21, 0 }
  0x3f   : > { %s497_s13 = smov [#allocation5]  }
  0x40   : > { %p428_p13 = pnand %p427_p6, %p695_p12  ;;  %s430_s26 = sshll.u32 %s497_s13, 4  ;;  %s431_s26 = int_to_ptr.vmem [resolvable:$false] %s430_s26 }
  0x41   : > { %s432_s27 = scalar_lea.vmem %s431_s26, 256  ;;  %p433_p10 = scmp.lt.s32.totalorder %s642_s14, %s431_s26 }
  0x42   : > { %p429_p7 = pneg %p428_p13  ;;  %p434_p2 = scmp.lt.s32.totalorder %s432_s27, %s426_s24 }
  0x44   : > { %p435_p4 = por %p434_p2, %p433_p10 }
  0x46   : > { %p436_p5 = pnand %p435_p4, %p429_p7 }
  0x51   : > { %207 = vperm.xlu0 %389, %v179_v5  }
  0xc8   : > { %v193_v7 = vpop.xlane.xlu0 %192 }
  0xc9   : > { %v194_v8 = vsub.f32 %v177_v1, %v193_v7  ;;  %v195_v9 = vsub.f32 %v178_v2, %v193_v7 }
  0xcb   : > { %v196_v11 = vmul.f32 1.442695, %v194_v8  ;;  %v198_v12 = vmul.f32 1.442695, %v195_v9 }
  0xcd   : > { %390 = vpow2.f32 %v196_v11 }
  0xce   : > { %392 = vpow2.f32 %v198_v12 }
  0xd0   : > { %v208_v14 = vpop.permute.xlu0 %207 }
  0xd1   : > { %vm210_vm1 = vcmp.eq.s32.totalorder %v182_v13, %v208_v14  ;;  %vm209_vm2 = vcmp.eq.s32.totalorder %v181_v10, %v208_v14 }
  0xd2   : > { %v212_v16 = vsel %vm210_vm1, 1.0, %v496_v15  ;;  %v211_v18 = vsel %vm209_vm2, 1.0, %v496_v15 }
  0xd3   : > { %v214_v19 = vmul.f32 %v212_v16, %v195_v9  ;;  %v213_v22 = vmul.f32 %v211_v18, %v194_v8 }
  0xd5   : > { %v215_v24 = vsel %vm189_vm0, %v214_v19, 0.0 }
  0xd6   : > { %v216_v25 = vadd.f32 %v215_v24, %v213_v22 }
  0xd7   : > { %v391_v17 = vpop.eup %390 }
  0xd8   : > { %v393_v20 = vpop.eup %392 }
  0xd9   : > { %v200_v21 = vsel %vm189_vm0, %v393_v20, 0.0 }
  0xda   : > { %v201_v23 = vadd.f32 %v391_v17, %v200_v21 }
  0xdc   : > { %202 = vadd.xlane.f32.xlu1 %v201_v23 }
  0xe0   : > { %217 = vadd.xlane.f32.xlu1 %v216_v25 }
 0x169   : > { %v203_v26 = vpop.xlane.xlu1 %202 }
 0x16a   : > { %394 = vlog2.f32 %v203_v26 }
 0x16d   : > { %v218_v33 = vpop.xlane.xlu1 %217 }
 0x174   : > { %v395_v29 = vpop.eup %394 }
 0x175   : > { %v205_v31 = vmul.f32 0.6931472, %v395_v29 }
 0x177   : > { %v219_v32 = vmul.f32 10.95, %v205_v31 }
 0x179   : > { %v220_v34 = vsub.f32 %v218_v33, %v219_v32 }
 0x17b   : > { %v221_v35 = vsel %vm188_vm3, %v220_v34, 0.0 }
 0x17c   : > { %v222_v36 = vrot.slane %v221_v35, 4 }
 0x17e   : > { %v223_v37 = vadd.f32 %v222_v36, %v221_v35 }
 0x180   : > { %v224_v38 = vrot.slane %v223_v37, 2 }
 0x182   : > { %v225_v39 = vadd.f32 %v224_v38, %v223_v37 }
 0x184   : > { %v226_v40 = vrot.slane %v225_v39, 1 }
 0x186   : > { %v227_v41 = vadd.f32 %v226_v40, %v225_v39 }
 0x188   : > { %228 = vst [vmem:[%s172_s8] sm:$0xff] %v227_v41 }
 0x189   : > { %439 = shalt.err (!%p436_p5)
}
 0x18a   : > { %s440_s25 = scalar_lea.hbm %s640_s19, 128  ;;  %s444_s30 = scalar_lea.hbm %s686_s2, 256 }
 0x18b   : > { %p441_p8 = scmp.ne.s32.totalorder %s640_s19, %s440_s25  ;;  %p445_p1 = scmp.lt.u32.totalorder %s640_s19, %s686_s2 }
 0x18c   : > { %p446_p3 = scmp.lt.u32.totalorder %s444_s30, %s440_s25  ;;  %p448_p6 = scmp.lt.u32.totalorder %s440_s25, %s640_s19 }
 0x18d   : > { %p442_p9 = pnand %p441_p8, %p695_p12 }
 0x18e   : > { %p447_p11 = por %p446_p3, %p445_p1 }
 0x18f   : > { %p443_p0 = pneg %p442_p9 }
 0x190   : > { %p449_p13 = por %p448_p6, %p447_p11 }
 0x192   : > { %p450_p7 = pnand %p449_p13, %p443_p0 }
 0x194   : > { %453 = shalt.err (!%p450_p7)
}
 0x195   : > { %343 = dma.vmem_to_hbm [thread:$0]  (%p695_p12), %s642_s14, 128, %s640_s19, %s230_s23  }
 0x196 PF: > { %s255_s5 = sand.u32 1, %s480_s9   ;;  %p696_p10 = scmp.ne.s32.totalorder %s691_s22, 0 }
 0x197   : > { %p697_p2 = scmp.ge.s32.totalorder %s492_s12, 2  ;;  %s256_s20 = scalar_lea.sflag [#allocation4], %s255_s5 }
 0x199   : > { %p350_p4 = pnand %p697_p2, %p696_p10 }
 0x19b   : > { %475 = dma.done.wait (!%p350_p4), %s256_s20, 128  }
 0x19c   : > { %477 = vsyncadd (!%p350_p4), %s256_s20, 4294967168  ;;  %p15_p5 = scmp.ge.s32.totalorder %s538_s15, 4   ;;  %s698_s9 = smov %s484_s10 }
 0x19d   : > { %s699_s10 = smov %s488_s11  ;;  %s700_s11 = smov %s550_s18 }
 0x19e   : > { %s701_s12 = smov %s538_s15  ;;  %17 = sbr.rel (!%p15_p5) target bundleno = 5 (0x5), region = 76 }
 0x1a5   :  { %261 = vsyncpa [#allocation3], 1 }
 0x1a6   :  { %263 = vsyncpa [#allocation3 + $0x1], 1 }
 0x1a7   :  { %264 = vsyncpa [#allocation4], 1 }
 0x1a8   :  { %266 = vsyncpa [#allocation4 + $0x1], 1 }

</bundles_post_ra>
